<compile_context>
chip_gen: v7x
topology: tpu7x:2x2x1
jax: 0.10.0
libtpu: 0.0.40
codegen_flags: <defaults>
</compile_context>

<pallas_src>
import functools

import jax
import jax.numpy as jnp
from jax.experimental import pallas as pl
from jax.experimental.pallas import tpu as pltpu

_MIB = 1024 * 1024


def _round_up(x, m):
    return -(-x // m) * m


def _vmem_capacity_bytes():
    """Generation-aware VMEM size (v5e/v6e: 128 MiB, v7x: 64 MiB per core)."""
    try:
        return int(pltpu.get_tpu_info().vmem_capacity_bytes)
    except Exception:  # detection unavailable -> assume the small-VMEM part
        return 64 * _MIB


def _budgets():
    cap = _vmem_capacity_bytes()
    if cap >= 96 * _MIB:            # v5e / v6e class (128 MiB physical VMEM)
        return {"vmem_limit": 64 * _MIB, "block_bytes": 8 * _MIB,
                "resident_max": 16 * _MIB}
    # v7x class (64 MiB physical VMEM): leave pipeline headroom under the limit.
    return {"vmem_limit": 40 * _MIB, "block_bytes": 6 * _MIB,
            "resident_max": 10 * _MIB}


# ------------------------------ kernels --------------------------------------


def _weights_partial_kernel(x_ref, wbd_ref, b_ref, pref_ref, part_ref, *,
                            n_nodes, tile_n):
    """Per-chunk partial sum over nodes of tanh(x @ W_bd + b) * pref.

    x_ref:    (tile_n, M*E) lane-dense node rows (native dtype, cast in-kernel)
    wbd_ref:  (M*E, M*P)    block-diagonal Linear weight (kron(I_M, W))
    b_ref:    (1, M*P)      bias tiled per metapath
    pref_ref: (1, M*P)      meta_preference flattened (lane index = m*P + p)
    part_ref: (1, 1, M*P)   this chunk's masked partial column sum
    """
    x = x_ref[...].astype(jnp.float32)
    t = jnp.tanh(jnp.dot(x, wbd_ref[...], preferred_element_type=jnp.float32)
                 + b_ref[...])                                  # (tile_n, M*P)
    # Mask node rows past N (ragged last tile): zeroes their contribution, so
    # no wrapper-side jnp.pad (and no pad-correction hack) is needed.
    row = (jax.lax.broadcasted_iota(jnp.int32, (tile_n, 1), 0)
           + pl.program_id(0) * tile_n)
    contrib = jnp.where(row < n_nodes, t * pref_ref[...], 0.0)
    part_ref[...] = jnp.sum(contrib, axis=0, keepdims=True)[None]  # (1,1,M*P)


def _weighted_sum_kernel(x_ref, s_ref, out_ref):
    """Lane-packed weighted sum over metapaths: out = x2 @ S.

    x_ref:  (tile, k*M*E)  k consecutive node rows per row (free packed view)
    s_ref:  (k*M*E, k*E)   S = kron(I_k, kron(meta_weights[:, None], I_E))
    out_ref:(tile, k*E)    k fused node rows per 128-lane-dense output row
    """
    out_ref[...] = jnp.dot(x_ref[...].astype(jnp.float32), s_ref[...],
                           preferred_element_type=jnp.float32
                           ).astype(out_ref.dtype)


def _resident_fuse_kernel(x_hbm, wbd_ref, b_ref, pref_ref, out_ref, w_ref,
                          x_vmem, sem, *, n_nodes, meta_num, embedding_dim,
                          pref_dim):
    """Single-call fusion: one HBM read of the embedding, all else from VMEM."""
    cp = pltpu.make_async_copy(x_hbm, x_vmem, sem)
    cp.start()
    cp.wait()
    x = x_vmem[...].astype(jnp.float32)                         # (N, M*E)

    # --- product-average attention weights (phase 1) --------------------------
    t = jnp.tanh(jnp.dot(x, wbd_ref[...], preferred_element_type=jnp.float32)
                 + b_ref[...])                                  # (N, M*P)
    pw = t * pref_ref[...]                                      # (N, M*P)
    P = pref_dim
    E = embedding_dim
    inv_n = 1.0 / n_nodes
    # Per-metapath product average, each kept as a (1, 1) tile.
    avg = [jnp.sum(pw[:, m * P:(m + 1) * P], keepdims=True) * inv_n
           for m in range(meta_num)]
    mx = avg[0]
    for m in range(1, meta_num):
        mx = jnp.maximum(mx, avg[m])
    ex = [jnp.exp(a - mx) for a in avg]
    den = ex[0]
    for m in range(1, meta_num):
        den = den + ex[m]
    inv_den = 1.0 / den

    # --- weighted sum over metapaths (exact f32 on the VPU, phase 2) ----------
    # Lane index of the flat layout is m*E + e, matching original_embedding's
    # contiguous (N, M, E) -> (N, M*E) reshape.
    acc = None
    for m in range(meta_num):
        wm = ex[m] * inv_den                                    # (1, 1) softmax
        w_ref[:, m:m + 1] = wm
        contrib = x[:, m * E:(m + 1) * E] * wm                  # (1,1) splat
        acc = contrib if acc is None else acc + contrib
    out_ref[...] = acc.astype(out_ref.dtype)


# ------------------------------ wrapper ---------------------------------------


def metapath_fuse(original_embedding, W, b, meta_preference, *,
                  force_two_pass=False, max_block_bytes=None):
    """original_embedding: (N, M, E) (any float dtype); W: (E, P) so x @ W ==
    x @ W_pt^T; b: (1, P); meta_preference: (M, P).
    Returns (weighted_embedding (N, E), meta_weights (M,))."""
    N, M, E = original_embedding.shape
    E_w, P = W.shape
    assert E_w == E
    ME, MP = M * E, M * P
    f32 = jnp.float32
    budgets = _budgets()

    # Lane-dense layout: (N, M*E), lane index = m*E + e.  Free contiguous
    # reshape; NOTE: no dtype cast here — the cast happens in-kernel so HBM
    # reads stay at the source width.
    orig_flat = original_embedding.reshape(N, ME)
    itemsize = orig_flat.dtype.itemsize
    row_bytes = ME * itemsize
    orig_bytes = N * row_bytes

    # Fold the per-metapath Linear into one block-diagonal weight so phase 1 is
    # a single lane-dense MXU matmul.  (NOTE: wastes (M-1)/M of MXU FLOPs —
    # fine while HBM-bound; switch to M batched (E, P) dots if it ever flips
    # compute-bound at large M*P.)
    W_bd = jnp.kron(jnp.eye(M, dtype=f32), W.astype(f32))       # (M*E, M*P)
    b_tiled = jnp.tile(b.reshape(1, P).astype(f32), (1, M))     # (1, M*P)
    pref_flat = meta_preference.astype(f32).reshape(1, MP)      # (1, M*P)

    # ------------------- path A: VMEM-resident single call ---------------------
    # Conservative gate: resident scratch + f32 working set (~3x orig) must fit
    # under the scoped VMEM limit.
    resident_ok = (not force_two_pass) and (orig_bytes <= budgets["resident_max"])
    if resident_ok:
        out, w_out = pl.pallas_call(
            functools.partial(_resident_fuse_kernel, n_nodes=N, meta_num=M,
                              embedding_dim=E, pref_dim=P),
            out_shape=(jax.ShapeDtypeStruct((N, E), original_embedding.dtype),
                       jax.ShapeDtypeStruct((1, M), f32)),
            grid_spec=pltpu.PrefetchScalarGridSpec(
                num_scalar_prefetch=0,
                grid=(1,),
                in_specs=[
                    pl.BlockSpec(memory_space=pl.ANY),   # embedding stays in HBM
                    pl.BlockSpec((ME, MP), lambda i: (0, 0)),
                    pl.BlockSpec((1, MP), lambda i: (0, 0)),
                    pl.BlockSpec((1, MP), lambda i: (0, 0)),
                ],
                out_specs=[
                    pl.BlockSpec((N, E), lambda i: (0, 0)),
                    pl.BlockSpec((1, M), lambda i: (0, 0)),
                ],
                scratch_shapes=[
                    pltpu.VMEM((N, ME), orig_flat.dtype),
                    pltpu.SemaphoreType.DMA(()),
                ],
            ),
            compiler_params=pltpu.CompilerParams(
                dimension_semantics=("arbitrary",),
                vmem_limit_bytes=budgets["vmem_limit"],
            ),
            cost_estimate=pl.CostEstimate(
                flops=2 * N * ME * MP + 4 * N * MP + 2 * N * ME,
                transcendentals=N * MP + 2 * M,
                bytes_accessed=orig_bytes + N * E * itemsize
                + 4 * (ME * MP + 2 * MP + M),
            ),
        )(orig_flat, W_bd, b_tiled, pref_flat)
        return out, w_out.reshape(M)

    # ------------------- path B: two streaming passes --------------------------
    block_bytes = (max_block_bytes if max_block_bytes is not None
                   else budgets["block_bytes"])
    tn = max(8, (min(block_bytes // row_bytes, _round_up(N, 8)) // 8) * 8)
    num_chunks = pl.cdiv(N, tn)

    # ---- pass 1: per-chunk partial product weights ----
    partials = pl.pallas_call(
        functools.partial(_weights_partial_kernel, n_nodes=N, tile_n=tn),
        out_shape=jax.ShapeDtypeStruct((num_chunks, 1, MP), f32),
        grid_spec=pltpu.PrefetchScalarGridSpec(
            num_scalar_prefetch=0,
            grid=(num_chunks,),
            in_specs=[
                pl.BlockSpec((tn, ME), lambda i: (i, 0)),
                # grid-invariant operands (TODO(synk): pl.Buffered(1) on v7x)
                pl.BlockSpec((ME, MP), lambda i: (0, 0)),
                pl.BlockSpec((1, MP), lambda i: (0, 0)),
                pl.BlockSpec((1, MP), lambda i: (0, 0)),
            ],
            out_specs=pl.BlockSpec((1, 1, MP), lambda i: (i, 0, 0)),
        ),
        compiler_params=pltpu.CompilerParams(
            dimension_semantics=("parallel",),
            vmem_limit_bytes=budgets["vmem_limit"],
        ),
        cost_estimate=pl.CostEstimate(
            flops=2 * N * ME * MP + 3 * N * MP,
            transcendentals=N * MP,
            bytes_accessed=orig_bytes
            + 4 * (ME * MP + 2 * MP + num_chunks * MP),
        ),
    )(orig_flat, W_bd, b_tiled, pref_flat)

    # Tiny finalize (M*P numbers) in plain JAX: group-sum over P, mean over the
    # true N (masked partials already exclude the ragged-tile garbage rows),
    # softmax over metapaths.
    total = jnp.sum(partials, axis=(0, 1))                      # (M*P,)
    avg = jnp.sum(total.reshape(M, P), axis=1) / N              # (M,)
    meta_weights = jax.nn.softmax(avg)                          # (M,)

    # ---- pass 2: weighted sum over metapaths, lane-dense packed output ----
    # Pack k = 128 // E fused node rows per 128-lane output row so the stores
    # are full-lane vst (E alone would waste (128-E)/128 of the store slot).
    # Both packed views are free, contiguous reshapes of the same buffers.
    if E < 128 and 128 % E == 0 and N % (128 // E) == 0:
        k = 128 // E
    else:
        k = 1  # TODO(synk): pad packed output rows to also cover N % k != 0
    rows2 = N // k
    x2 = orig_flat.reshape(rows2, k * ME)
    # S[(j*M*E + m*E + e), (j'*E + e')] = meta_weights[m] * (j==j') * (e==e')
    S = jnp.kron(jnp.eye(k, dtype=f32),
                 jnp.kron(meta_weights.reshape(M, 1), jnp.eye(E, dtype=f32)))
    row2_bytes = k * ME * itemsize
    tn2 = max(8, (min(block_bytes // row2_bytes, _round_up(rows2, 8)) // 8) * 8)
    num_chunks2 = pl.cdiv(rows2, tn2)

    fused2 = pl.pallas_call(
        _weighted_sum_kernel,
        out_shape=jax.ShapeDtypeStruct((rows2, k * E), original_embedding.dtype),
        grid_spec=pltpu.PrefetchScalarGridSpec(
            num_scalar_prefetch=0,
            grid=(num_chunks2,),
            in_specs=[
                pl.BlockSpec((tn2, k * ME), lambda i: (i, 0)),
                pl.BlockSpec((k * ME, k * E), lambda i: (0, 0)),
            ],
            out_specs=pl.BlockSpec((tn2, k * E), lambda i: (i, 0)),
        ),
        compiler_params=pltpu.CompilerParams(
            dimension_semantics=("parallel",),
            vmem_limit_bytes=budgets["vmem_limit"],
        ),
        cost_estimate=pl.CostEstimate(
            flops=2 * rows2 * (k * ME) * (k * E),
            transcendentals=0,
            bytes_accessed=orig_bytes + N * E * itemsize
            + 4 * (k * ME) * (k * E),
        ),
    )(x2, S)

    return fused2.reshape(N, E), meta_weights


# ------------------------------ reference (pure JAX) ---------------------------


def _reference(original_embedding, W, b, meta_preference):
    t = jnp.tanh(jnp.einsum("nme,ep->nmp", original_embedding, W) + b)
    pw = jnp.sum(t * meta_preference[None], axis=2)              # (N, M)
    avg = jnp.mean(pw, axis=0)                                   # (M,)
    mw = jax.nn.softmax(avg, axis=0)                             # (M,)
    return jnp.sum(original_embedding * mw[None, :, None], axis=1), mw


def _check(name, got_emb, got_w, oe, W, b, pref, atol=2e-5, rtol=2e-5):
    ref_emb, ref_w = _reference(oe, W, b, pref)
    assert jnp.allclose(got_w, ref_w, atol=atol, rtol=rtol), (
        name, float(jnp.max(jnp.abs(got_w - ref_w))))
    assert jnp.allclose(got_emb, ref_emb, atol=atol, rtol=rtol), (
        name, float(jnp.max(jnp.abs(got_emb - ref_emb))))


# ------------------------------ main ------------------------------------------


if __name__ == "__main__":
    key = jax.random.PRNGKey(0)

    # module hyper-parameters (args.*)
    meta_num = 4              # M
    embedding_dim = 32        # E
    meta_preference_dim = 16  # P
    n_train = 16              # number of train_nodes (N)
    table_size = 24           # nodes stored per metapath embedding table

    k_pref, k_w, k_b, k_emb, k_big1, k_big2 = jax.random.split(key, 6)

    # deterministic parameter init (xavier-uniform style)
    bound_pref = (6.0 / (meta_num + meta_preference_dim)) ** 0.5
    meta_preference = jax.random.uniform(
        k_pref, (meta_num, meta_preference_dim), jnp.float32,
        minval=-bound_pref, maxval=bound_pref)
    bound_w = (6.0 / (embedding_dim + meta_preference_dim)) ** 0.5
    # stored (E, P): kernel computes x @ W == x @ W_pt^T
    W = jax.random.uniform(
        k_w, (embedding_dim, meta_preference_dim), jnp.float32,
        minval=-bound_w, maxval=bound_w)
    b = jax.random.uniform(
        k_b, (1, meta_preference_dim), jnp.float32, minval=-0.1, maxval=0.1)

    # synthetic meta_embedding tables + index maps (glue, plain JAX/Python)
    meta_names = [f"meta{m}" for m in range(meta_num)]
    emb_keys = jax.random.split(k_emb, meta_num)
    meta_embedding = {
        name: jax.random.normal(emb_keys[m], (table_size, embedding_dim),
                                jnp.float32)
        for m, name in enumerate(meta_names)
    }
    train_nodes = [int(p) for p in range(1, n_train + 1)]
    meta_node_indexmap = {
        name: {paper: (paper * (m + 3)) % table_size for paper in train_nodes}
        for m, name in enumerate(meta_names)
    }

    # original_embedding: (N, M, E) gather (glue)
    original_embedding = jnp.stack(
        [
            jnp.stack(
                [meta_embedding[name][meta_node_indexmap[name][paper]]
                 for name in meta_names],
                axis=0,
            )
            for paper in train_nodes
        ],
        axis=0,
    )

    # ---- test 1: module-sized demo (VMEM-resident single-call path) ----------
    fuse_resident = jax.jit(metapath_fuse)
    weighted_embedding, meta_weights = fuse_resident(
        original_embedding, W, b, meta_preference)
    weighted_embedding = jax.block_until_ready(weighted_embedding)

    # build the output dict exactly like the PyTorch forward (glue)
    vectors = {paper: weighted_embedding[i] for i, paper in enumerate(train_nodes)}
    vectors[0] = jnp.zeros((embedding_dim,), jnp.float32)

    _check("resident", weighted_embedding, meta_weights,
           original_embedding, W, b, meta_preference)

    # ---- test 2: streaming two-pass path, ragged tiles + packed (k=4) output --
    oe_big = jax.random.normal(k_big1, (600, meta_num, embedding_dim), jnp.float32)
    fuse_streamed = jax.jit(functools.partial(
        metapath_fuse, force_two_pass=True, max_block_bytes=64 * 1024))
    emb2, w2 = fuse_streamed(oe_big, W, b, meta_preference)
    emb2 = jax.block_until_ready(emb2)
    _check("streamed_packed", emb2, w2, oe_big, W, b, meta_preference)

    # ---- test 3: streaming path, N not multiple of 8/k (k=1 fallback) ---------
    oe_odd = jax.random.normal(k_big2, (37, meta_num, embedding_dim), jnp.float32)
    fuse_streamed_small = jax.jit(functools.partial(
        metapath_fuse, force_two_pass=True, max_block_bytes=8 * 1024))
    emb3, w3 = fuse_streamed_small(oe_odd, W, b, meta_preference)
    emb3 = jax.block_until_ready(emb3)
    _check("streamed_ragged", emb3, w3, oe_odd, W, b, meta_preference)

    print("KERNEL_OK")
</pallas_src>

<mosaic_0001>
module attributes {stable_mosaic.version = 11 : i64} {
  func.func @_resident_fuse_kernel(%arg0: i32, %arg1: memref<16x128xf32, #tpu.memory_space<any>>, %arg2: memref<128x64xf32, #tpu.memory_space<vmem>>, %arg3: memref<1x64xf32, #tpu.memory_space<vmem>>, %arg4: memref<1x64xf32, #tpu.memory_space<vmem>>, %arg5: memref<16x32xf32, #tpu.memory_space<vmem>>, %arg6: memref<1x4xf32, #tpu.memory_space<vmem>>, %arg7: memref<16x128xf32, #tpu.memory_space<vmem>>, %arg8: memref<!tpu.dma_semaphore, #tpu.memory_space<semaphore_mem>>) attributes {dimension_semantics = [#tpu.dimension_semantics<arbitrary>], iteration_bounds = array<i64: 1>, scalar_prefetch = 0 : i64, scratch_operands = 2 : i64, tpu.core_type = #tpu.core_type<tc>, window_params = [{}, {pipeline_mode = #tpu.pipeline_mode<synchronous>, transform_indices = @transform_1, window_bounds = array<i64: 128, 64>}, {pipeline_mode = #tpu.pipeline_mode<synchronous>, transform_indices = @transform_2, window_bounds = array<i64: 1, 64>}, {pipeline_mode = #tpu.pipeline_mode<synchronous>, transform_indices = @transform_3, window_bounds = array<i64: 1, 64>}, {pipeline_mode = #tpu.pipeline_mode<synchronous>, transform_indices = @transform_4, window_bounds = array<i64: 16, 32>}, {pipeline_mode = #tpu.pipeline_mode<synchronous>, transform_indices = @transform_5, window_bounds = array<i64: 1, 4>}]} {
    tpu.enqueue_dma source(%arg1 : memref<16x128xf32, #tpu.memory_space<any>>) target(%arg7 : memref<16x128xf32, #tpu.memory_space<vmem>>) target_semaphore(%arg8 : memref<!tpu.dma_semaphore, #tpu.memory_space<semaphore_mem>>)
    tpu.wait_dma2 semaphore(%arg8 : memref<!tpu.dma_semaphore, #tpu.memory_space<semaphore_mem>>) src(%arg1 : memref<16x128xf32, #tpu.memory_space<any>>) dst(%arg7 : memref<16x128xf32, #tpu.memory_space<vmem>>)
    %c0 = arith.constant 0 : index
    %c0_0 = arith.constant 0 : index
    %0 = vector.load %arg7[%c0, %c0_0] : memref<16x128xf32, #tpu.memory_space<vmem>>, vector<16x128xf32>
    %c0_1 = arith.constant 0 : index
    %c0_2 = arith.constant 0 : index
    %1 = vector.load %arg2[%c0_1, %c0_2] : memref<128x64xf32, #tpu.memory_space<vmem>>, vector<128x64xf32>
    %cst = arith.constant dense<0.000000e+00> : vector<16x64xf32>
    %2 = tpu.matmul %0, %1, %cst {dimension_numbers = #tpu.dot_dimension_numbers<[1], [0], [0], [1], [0, 0, 1, 1], [], []>} : vector<16x128xf32>, vector<128x64xf32>, vector<16x64xf32> -> vector<16x64xf32>
    %c0_3 = arith.constant 0 : index
    %c0_4 = arith.constant 0 : index
    %3 = vector.load %arg3[%c0_3, %c0_4] : memref<1x64xf32, #tpu.memory_space<vmem>>, vector<1x64xf32>
    %4 = vector.broadcast %3 : vector<1x64xf32> to vector<16x64xf32>
    %5 = arith.addf %2, %4 : vector<16x64xf32>
    %6 = math.tanh %5 : vector<16x64xf32>
    %c0_5 = arith.constant 0 : index
    %c0_6 = arith.constant 0 : index
    %7 = vector.load %arg4[%c0_5, %c0_6] : memref<1x64xf32, #tpu.memory_space<vmem>>, vector<1x64xf32>
    %8 = vector.broadcast %7 : vector<1x64xf32> to vector<16x64xf32>
    %9 = arith.mulf %6, %8 : vector<16x64xf32>
    %10 = vector.extract_strided_slice %9 {offsets = [0, 0], sizes = [16, 16], strides = [1, 1]} : vector<16x64xf32> to vector<16x16xf32>
    %11 = vector.shape_cast %10 : vector<16x16xf32> to vector<1x16x16xf32>
    %cst_7 = arith.constant dense<0.000000e+00> : vector<1xf32>
    %12 = vector.multi_reduction <add>, %11, %cst_7 [1, 2] : vector<1x16x16xf32> to vector<1xf32>
    %13 = vector.shape_cast %12 : vector<1xf32> to vector<1x1x1xf32>
    %14 = vector.extract %13[0, 0, 0] : f32 from vector<1x1x1xf32>
    %15 = vector.broadcast %14 : f32 to vector<1x1xf32>
    %cst_8 = arith.constant 6.250000e-02 : f32
    %16 = vector.broadcast %cst_8 : f32 to vector<1x1xf32>
    %17 = arith.mulf %15, %16 : vector<1x1xf32>
    %18 = vector.extract_strided_slice %9 {offsets = [0, 16], sizes = [16, 16], strides = [1, 1]} : vector<16x64xf32> to vector<16x16xf32>
    %19 = vector.shape_cast %18 : vector<16x16xf32> to vector<1x16x16xf32>
    %cst_9 = arith.constant dense<0.000000e+00> : vector<1xf32>
    %20 = vector.multi_reduction <add>, %19, %cst_9 [1, 2] : vector<1x16x16xf32> to vector<1xf32>
    %21 = vector.shape_cast %20 : vector<1xf32> to vector<1x1x1xf32>
    %22 = vector.extract %21[0, 0, 0] : f32 from vector<1x1x1xf32>
    %23 = vector.broadcast %22 : f32 to vector<1x1xf32>
    %cst_10 = arith.constant 6.250000e-02 : f32
    %24 = vector.broadcast %cst_10 : f32 to vector<1x1xf32>
    %25 = arith.mulf %23, %24 : vector<1x1xf32>
    %26 = vector.extract_strided_slice %9 {offsets = [0, 32], sizes = [16, 16], strides = [1, 1]} : vector<16x64xf32> to vector<16x16xf32>
    %27 = vector.shape_cast %26 : vector<16x16xf32> to vector<1x16x16xf32>
    %cst_11 = arith.constant dense<0.000000e+00> : vector<1xf32>
    %28 = vector.multi_reduction <add>, %27, %cst_11 [1, 2] : vector<1x16x16xf32> to vector<1xf32>
    %29 = vector.shape_cast %28 : vector<1xf32> to vector<1x1x1xf32>
    %30 = vector.extract %29[0, 0, 0] : f32 from vector<1x1x1xf32>
    %31 = vector.broadcast %30 : f32 to vector<1x1xf32>
    %cst_12 = arith.constant 6.250000e-02 : f32
    %32 = vector.broadcast %cst_12 : f32 to vector<1x1xf32>
    %33 = arith.mulf %31, %32 : vector<1x1xf32>
    %34 = vector.extract_strided_slice %9 {offsets = [0, 48], sizes = [16, 16], strides = [1, 1]} : vector<16x64xf32> to vector<16x16xf32>
    %35 = vector.shape_cast %34 : vector<16x16xf32> to vector<1x16x16xf32>
    %cst_13 = arith.constant dense<0.000000e+00> : vector<1xf32>
    %36 = vector.multi_reduction <add>, %35, %cst_13 [1, 2] : vector<1x16x16xf32> to vector<1xf32>
    %37 = vector.shape_cast %36 : vector<1xf32> to vector<1x1x1xf32>
    %38 = vector.extract %37[0, 0, 0] : f32 from vector<1x1x1xf32>
    %39 = vector.broadcast %38 : f32 to vector<1x1xf32>
    %cst_14 = arith.constant 6.250000e-02 : f32
    %40 = vector.broadcast %cst_14 : f32 to vector<1x1xf32>
    %41 = arith.mulf %39, %40 : vector<1x1xf32>
    %42 = arith.maximumf %17, %25 : vector<1x1xf32>
    %43 = arith.maximumf %42, %33 : vector<1x1xf32>
    %44 = arith.maximumf %43, %41 : vector<1x1xf32>
    %45 = arith.subf %17, %44 : vector<1x1xf32>
    %46 = math.exp %45 : vector<1x1xf32>
    %47 = arith.subf %25, %44 : vector<1x1xf32>
    %48 = math.exp %47 : vector<1x1xf32>
    %49 = arith.subf %33, %44 : vector<1x1xf32>
    %50 = math.exp %49 : vector<1x1xf32>
    %51 = arith.subf %41, %44 : vector<1x1xf32>
    %52 = math.exp %51 : vector<1x1xf32>
    %53 = arith.addf %46, %48 : vector<1x1xf32>
    %54 = arith.addf %53, %50 : vector<1x1xf32>
    %55 = arith.addf %54, %52 : vector<1x1xf32>
    %cst_15 = arith.constant 1.000000e+00 : f32
    %56 = vector.broadcast %cst_15 : f32 to vector<1x1xf32>
    %57 = arith.divf %56, %55 : vector<1x1xf32>
    %58 = arith.mulf %46, %57 : vector<1x1xf32>
    %c0_16 = arith.constant 0 : index
    %c0_17 = arith.constant 0 : index
    %59 = vector.load %arg6[%c0_16, %c0_17] : memref<1x4xf32, #tpu.memory_space<vmem>>, vector<1x1xf32>
    tpu.vector_store %arg6[%c0_16, %c0_17], %58 {strides = array<i32>} : memref<1x4xf32, #tpu.memory_space<vmem>>, vector<1x1xf32>,
    %60 = vector.extract_strided_slice %0 {offsets = [0, 0], sizes = [16, 32], strides = [1, 1]} : vector<16x128xf32> to vector<16x32xf32>
    %61 = vector.broadcast %58 : vector<1x1xf32> to vector<16x32xf32>
    %62 = arith.mulf %60, %61 : vector<16x32xf32>
    %63 = arith.mulf %48, %57 : vector<1x1xf32>
    %c0_18 = arith.constant 0 : index
    %c1 = arith.constant 1 : index
    %64 = vector.load %arg6[%c0_18, %c1] : memref<1x4xf32, #tpu.memory_space<vmem>>, vector<1x1xf32>
    tpu.vector_store %arg6[%c0_18, %c1], %63 {strides = array<i32>} : memref<1x4xf32, #tpu.memory_space<vmem>>, vector<1x1xf32>,
    %65 = vector.extract_strided_slice %0 {offsets = [0, 32], sizes = [16, 32], strides = [1, 1]} : vector<16x128xf32> to vector<16x32xf32>
    %66 = vector.broadcast %63 : vector<1x1xf32> to vector<16x32xf32>
    %67 = arith.mulf %65, %66 : vector<16x32xf32>
    %68 = arith.addf %62, %67 : vector<16x32xf32>
    %69 = arith.mulf %50, %57 : vector<1x1xf32>
    %c0_19 = arith.constant 0 : index
    %c2 = arith.constant 2 : index
    %70 = vector.load %arg6[%c0_19, %c2] : memref<1x4xf32, #tpu.memory_space<vmem>>, vector<1x1xf32>
    tpu.vector_store %arg6[%c0_19, %c2], %69 {strides = array<i32>} : memref<1x4xf32, #tpu.memory_space<vmem>>, vector<1x1xf32>,
    %71 = vector.extract_strided_slice %0 {offsets = [0, 64], sizes = [16, 32], strides = [1, 1]} : vector<16x128xf32> to vector<16x32xf32>
    %72 = vector.broadcast %69 : vector<1x1xf32> to vector<16x32xf32>
    %73 = arith.mulf %71, %72 : vector<16x32xf32>
    %74 = arith.addf %68, %73 : vector<16x32xf32>
    %75 = arith.mulf %52, %57 : vector<1x1xf32>
    %c0_20 = arith.constant 0 : index
    %c3 = arith.constant 3 : index
    %76 = vector.load %arg6[%c0_20, %c3] : memref<1x4xf32, #tpu.memory_space<vmem>>, vector<1x1xf32>
    tpu.vector_store %arg6[%c0_20, %c3], %75 {strides = array<i32>} : memref<1x4xf32, #tpu.memory_space<vmem>>, vector<1x1xf32>,
    %77 = vector.extract_strided_slice %0 {offsets = [0, 96], sizes = [16, 32], strides = [1, 1]} : vector<16x128xf32> to vector<16x32xf32>
    %78 = vector.broadcast %75 : vector<1x1xf32> to vector<16x32xf32>
    %79 = arith.mulf %77, %78 : vector<16x32xf32>
    %80 = arith.addf %74, %79 : vector<16x32xf32>
    %c0_21 = arith.constant 0 : index
    %c0_22 = arith.constant 0 : index
    %81 = vector.load %arg5[%c0_21, %c0_22] : memref<16x32xf32, #tpu.memory_space<vmem>>, vector<16x32xf32>
    tpu.vector_store %arg5[%c0_21, %c0_22], %80 {strides = array<i32>} : memref<16x32xf32, #tpu.memory_space<vmem>>, vector<16x32xf32>,
    return
  }
  func.func @transform_1(%arg0: i32) -> (i32, i32) {
    %c0_i32 = arith.constant 0 : i32
    %c0_i32_0 = arith.constant 0 : i32
    %c0_i32_1 = arith.constant 0 : i32
    return %c0_i32, %c0_i32_0 : i32, i32
  }
  func.func @transform_2(%arg0: i32) -> (i32, i32) {
    %c0_i32 = arith.constant 0 : i32
    %c0_i32_0 = arith.constant 0 : i32
    %c0_i32_1 = arith.constant 0 : i32
    return %c0_i32, %c0_i32_0 : i32, i32
  }
  func.func @transform_3(%arg0: i32) -> (i32, i32) {
    %c0_i32 = arith.constant 0 : i32
    %c0_i32_0 = arith.constant 0 : i32
    %c0_i32_1 = arith.constant 0 : i32
    return %c0_i32, %c0_i32_0 : i32, i32
  }
  func.func @transform_4(%arg0: i32) -> (i32, i32) {
    %c0_i32 = arith.constant 0 : i32
    %c0_i32_0 = arith.constant 0 : i32
    %c0_i32_1 = arith.constant 0 : i32
    return %c0_i32, %c0_i32_0 : i32, i32
  }
  func.func @transform_5(%arg0: i32) -> (i32, i32) {
    %c0_i32 = arith.constant 0 : i32
    %c0_i32_0 = arith.constant 0 : i32
    %c0_i32_1 = arith.constant 0 : i32
    return %c0_i32, %c0_i32_0 : i32, i32
  }
}

</mosaic_0001>

<bundles_post_ra>
// kernel: metapath_fuse.1
= control target key start
LH: loop header
LB: loop body
LE: loop exit
PB: predicated region body
PF: predicated region fallthrough
CT: control target
= control target key end

     0   :  { %11 = vsyncpa [#allocation5], 0  ;;  %s689_s0 = inlined_call_operand.vmem [shape: f32[16,128], index: 0, kind: input, shape index: {}]   ;;  %s690_s1 = inlined_call_operand.vmem [shape: f32[128,64], index: 1, kind: input, shape index: {}]   ;;  %s691_s2 = inlined_call_operand.vmem [shape: f32[1,64], index: 2, kind: input, shape index: {}]   ;;  %s692_s3 = inlined_call_operand.vmem [shape: f32[1,64], index: 3, kind: input, shape index: {}]   ;;  %s693_s4 = inlined_call_operand.hbm [shape: f32[16,32], index: 4, kind: output, shape index: {0}]   ;;  %s694_s5 = inlined_call_operand.hbm [shape: f32[1,4], index: 5, kind: output, shape index: {1}]  }
   0x1   :  { %12 = vsyncpa [#allocation7], 0  ;;  %v582_v0 = vld [vmem:[%s689_s0] sm:$0xff]  ;;  %v587_v1 = vld [vmem:[%s689_s0 + $0x8] sm:$0xff] }
   0x2   :  { %62 = vsyncadd [#allocation3], 256 }
   0x3   :  { %534 = dma.done.wait [#allocation3], 256 }
   0x4   :  { %535 = vsyncadd [#allocation3], 4294967040  ;;  %424 = vmatprep.mubr.f32.mxu0 %v582_v0  ;;  %v68_v2 = vld [vmem:[%s690_s1] sm:$0xff]  ;;  %v69_v3 = vld [vmem:[%s690_s1 + $0x8] sm:$0xff]  ;;  %vm177_vm0 = vcmask 130048   ;;  %s540_s30 = smov 96  }
   0x5   :  { %v70_v4 = vld [vmem:[%s690_s1 + $0x10] sm:$0xff]  ;;  %v427_v5 = vpack.c.bf16 %v69_v3, %v68_v2  ;;  %v71_v6 = vld [vmem:[%s690_s1 + $0x18] sm:$0xff]  ;;  %v72_v8 = vld [vmem:[%s690_s1 + $0x20] sm:$0xff]  ;;  %s541_s6 = smov 112   ;;  %vm275_vm1 = vcmask 0   ;;  %vm280_vm2 = vcmask 8200  }
   0x6   :  { %v431_v7 = vpack.c.bf16 %v71_v6, %v70_v4  ;;  %v73_v9 = vld [vmem:[%s690_s1 + $0x28] sm:$0xff]  ;;  %v74_v11 = vld [vmem:[%s690_s1 + $0x30] sm:$0xff]  ;;  %v75_v12 = vld [vmem:[%s690_s1 + $0x38] sm:$0xff]  ;;  %vm295_vm3 = vcmask 16400   ;;  %vm310_vm4 = vcmask 24600   ;;  %s543_s10 = smov 32  }
   0x7   :  { %428 = vmatprep.subr.bf16.mxu0 %v427_v5  ;;  %v435_v10 = vpack.c.bf16 %v73_v9, %v72_v8  ;;  %v439_v13 = vpack.c.bf16 %v75_v12, %v74_v11  ;;  %v76_v14 = vld [vmem:[%s690_s1 + $0x40] sm:$0xff]  ;;  %v77_v15 = vld [vmem:[%s690_s1 + $0x48] sm:$0xff]  ;;  %v78_v17 = vld [vmem:[%s690_s1 + $0x50] sm:$0xff]  ;;  %s544_s11 = smov 64   ;;  %s545_s12 = smov [#allocation6]  }
   0x8   :  { %430 = vmatpush3.bf16.msra.mxu0 %v427_v5  ;;  %v443_v16 = vpack.c.bf16 %v77_v15, %v76_v14  ;;  %v79_v18 = vld [vmem:[%s690_s1 + $0x58] sm:$0xff]  ;;  %v80_v20 = vld [vmem:[%s690_s1 + $0x60] sm:$0xff]  ;;  %v81_v21 = vld [vmem:[%s690_s1 + $0x68] sm:$0xff]  ;;  %s345_s13 = sshll.u32 %s545_s12, 4  ;;  %s346_s13 = int_to_ptr.vmem [resolvable:$true] %s345_s13 }
   0x9   :  { %432 = vmatprep.subr.bf16.mxu0 %v431_v7  ;;  %v447_v19 = vpack.c.bf16 %v79_v18, %v78_v17  ;;  %v451_v22 = vpack.c.bf16 %v81_v21, %v80_v20  ;;  %v82_v23 = vld [vmem:[%s690_s1 + $0x70] sm:$0xff]  ;;  %v83_v24 = vld [vmem:[%s690_s1 + $0x78] sm:$0xff]  ;;  %v371_v26 = vld [vmem:[%s691_s2] ss:$0 sm:$0xff]  ;;  %s542_s2 = smov 80   ;;  %s490_s14 = scalar_lea.vmem %s346_s13, 16 }
   0xa   :  { %v455_v25 = vpack.c.bf16 %v83_v24, %v82_v23  ;;  %v372_v31 = vld [vmem:[%s692_s3] ss:$0 sm:$0xff]  ;;  %p491_p0 = scmp.ne.s32.totalorder %s346_s13, %s490_s14  ;;  %s494_s15 = scalar_lea.vmem %s346_s13, 32 }
   0xb   :  { %p495_p1 = scmp.lt.s32.totalorder %s346_s13, %s346_s13  ;;  %p496_p2 = scmp.lt.s32.totalorder %s494_s15, %s490_s14 }
   0xc   :  { %434 = vmatpush3.bf16.msra.mxu0 %v431_v7 }
   0xd   :  { %436 = vmatprep.subr.bf16.mxu0 %v435_v10  ;;  %p497_p3 = por %p496_p2, %p495_p1 }
   0xf   :  { %p498_p4 = pnand %p497_p3, %p491_p0 }
  0x10   :  { %438 = vmatpush3.bf16.msra.mxu0 %v435_v10 }
  0x11   :  { %440 = vmatprep.subr.bf16.mxu0 %v439_v13 }
  0x14   :  { %442 = vmatpush3.bf16.msra.mxu0 %v439_v13 }
  0x15   :  { %444 = vmatprep.subr.bf16.mxu0 %v443_v16 }
  0x18   :  { %446 = vmatpush3.bf16.msra.mxu0 %v443_v16 }
  0x19   :  { %448 = vmatprep.subr.bf16.mxu0 %v447_v19 }
  0x1c   :  { %450 = vmatpush3.bf16.msra.mxu0 %v447_v19 }
  0x1d   :  { %452 = vmatprep.subr.bf16.mxu0 %v451_v22 }
  0x20   :  { %454 = vmatpush3.bf16.msra.mxu0 %v451_v22 }
  0x21   :  { %456 = vmatprep.subr.bf16.mxu0 %v455_v25 }
  0x24   :  { %458 = vmatpush3.bf16.msra.mxu0 %v455_v25 }
  0x27   :  { %425 = vmatmul.mubr.f32.vlgmr.msra.gmra.mrb[0].mxu0 %v587_v1 }
  0xfa   :  { %v426_v27 = vpop.f32.mrb[0].mxu0 }
  0xfb   :  { %v163_v28 = vadd.f32 %v426_v27, %v371_v26  ;;  %v157_v29 = vpop.f32.mrb[1].mxu0 }
  0xfc   :  { %v158_v30 = vadd.f32 %v371_v26, %v157_v29 }
  0xfd   :  { %476 = vtanh.f32 %v163_v28 }
  0xfe   :  { %478 = vtanh.f32 %v158_v30 }
 0x107   :  { %v477_v32 = vpop.eup %476 }
 0x108   :  { %v479_v33 = vpop.eup %478  ;;  %v176_v34 = vmul.f32 %v477_v32, %v372_v31 }
 0x109   :  { %v175_v35 = vmul.f32 %v479_v33, %v372_v31 }
 0x10a   :  { %216 = vrot.lane.b32.xlu1 %v176_v34, %s540_s30  ;;  %196 = vrot.lane.b32.xlu0 %v176_v34, %s541_s6  ;;  %v179_v36 = vsel %vm177_vm0, %v176_v34, 0.0 }
 0x10b   :  { %v178_v37 = vsel %vm177_vm0, %v175_v35, 0.0 }
 0x10c   :  { %v180_v38 = vadd.f32 %v179_v36, %v178_v37 }
 0x10e   :  { %214 = vrot.lane.b32.xlu1 %v175_v35, %s540_s30  ;;  %194 = vrot.lane.b32.xlu0 %v175_v35, %s541_s6 }
 0x112   :  { %236 = vrot.lane.b32.xlu1 %v176_v34, %s542_s2  ;;  %234 = vrot.lane.b32.xlu0 %v175_v35, %s542_s2 }
 0x131   :  { %181 = vadd.xlane.f32.xlu0 %v180_v38 }
 0x17c   :  { %v217_v39 = vpop.permute.xlu1 %216  ;;  %v197_v40 = vpop.permute.xlu0 %196 }
 0x17d   :  { %v221_v43 = vsel %vm177_vm0, %v217_v39, 0.0  ;;  %v201_v44 = vsel %vm177_vm0, %v197_v40, 0.0 }
 0x180   :  { %v215_v41 = vpop.permute.xlu1 %214  ;;  %v195_v42 = vpop.permute.xlu0 %194 }
 0x181   :  { %v220_v45 = vsel %vm177_vm0, %v215_v41, 0.0  ;;  %v200_v46 = vsel %vm177_vm0, %v195_v42, 0.0 }
 0x182   :  { %v202_v47 = vadd.f32 %v201_v44, %v200_v46  ;;  %v222_v48 = vadd.f32 %v221_v43, %v220_v45 }
 0x184   :  { %v237_v49 = vpop.permute.xlu1 %236  ;;  %203 = vadd.xlane.f32.xlu1 %v202_v47  ;;  %v235_v50 = vpop.permute.xlu0 %234  ;;  %223 = vadd.xlane.f32.xlu0 %v222_v48 }
 0x185   :  { %v241_v51 = vsel %vm177_vm0, %v237_v49, 0.0  ;;  %v240_v52 = vsel %vm177_vm0, %v235_v50, 0.0 }
 0x186   :  { %v242_v53 = vadd.f32 %v241_v51, %v240_v52 }
 0x188   :  { %243 = vadd.xlane.f32.xlu0 %v242_v53 }
 0x1be   :  { %v182_v54 = vpop.xlane.xlu0 %181 }
 0x1bf   :  { %v183_v55 = vrot.slane %v182_v54, 4 }
 0x1c1   :  { %v184_v56 = vadd.f32 %v183_v55, %v182_v54 }
 0x1c3   :  { %v185_v57 = vrot.slane %v184_v56, 2 }
 0x1c5   :  { %v186_v58 = vadd.f32 %v185_v57, %v184_v56 }
 0x1c7   :  { %v187_v59 = vrot.slane %v186_v58, 1 }
 0x1c9   :  { %v188_v60 = vadd.f32 %v187_v59, %v186_v58 }
 0x1cb   :  { %459 = vpush %v188_v60 }
 0x1fc   :  { %s460_s3 = spop %459 }
 0x1fd   :  { %v190_v20 = vstv %s460_s3 }
 0x1fe   :  { %v191_v22 = vmul.f32 0.0625, %v190_v20 }
 0x211   :  { %v204_v61 = vpop.xlane.xlu1 %203  ;;  %v224_v62 = vpop.xlane.xlu0 %223 }
 0x212   :  { %v205_v63 = vrot.slane %v204_v61, 4  ;;  %v225_v2 = vrot.slane %v224_v62, 4 }
 0x214   :  { %v206_v3 = vadd.f32 %v205_v63, %v204_v61  ;;  %v226_v4 = vadd.f32 %v225_v2, %v224_v62 }
 0x215   :  { %v244_v5 = vpop.xlane.xlu0 %243 }
 0x216   :  { %v207_v6 = vrot.slane %v206_v3, 2  ;;  %v227_v7 = vrot.slane %v226_v4, 2  ;;  %v245_v8 = vrot.slane %v244_v5, 4 }
 0x218   :  { %v246_v9 = vadd.f32 %v245_v8, %v244_v5  ;;  %v208_v10 = vadd.f32 %v207_v6, %v206_v3  ;;  %v228_v11 = vadd.f32 %v227_v7, %v226_v4 }
 0x21a   :  { %v247_v12 = vrot.slane %v246_v9, 2  ;;  %v209_v13 = vrot.slane %v208_v10, 1  ;;  %v229_v14 = vrot.slane %v228_v11, 1 }
 0x21c   :  { %v210_v15 = vadd.f32 %v209_v13, %v208_v10  ;;  %v230_v16 = vadd.f32 %v229_v14, %v228_v11  ;;  %v248_v17 = vadd.f32 %v247_v12, %v246_v9 }
 0x21e   :  { %461 = vpush %v210_v15  ;;  %v249_v18 = vrot.slane %v248_v17, 1 }
 0x21f   :  { %463 = vpush %v230_v16 }
 0x220   :  { %v250_v19 = vadd.f32 %v249_v18, %v248_v17 }
 0x222   :  { %465 = vpush %v250_v19 }
 0x24f   :  { %s462_s7 = spop %461 }
 0x250   :  { %v212_v21 = vstv %s462_s7  ;;  %s464_s8 = spop %463 }
 0x251   :  { %v213_v23 = vmul.f32 0.0625, %v212_v21  ;;  %v232_v24 = vstv %s464_s8 }
 0x252   :  { %v233_v26 = vmul.f32 0.0625, %v232_v24 }
 0x253   :  { %v254_v25 = vmax.f32 %v191_v22, %v213_v23  ;;  %s466_s9 = spop %465 }
 0x254   :  { %v252_v27 = vstv %s466_s9 }
 0x255   :  { %v255_v28 = vmax.f32 %v254_v25, %v233_v26  ;;  %v253_v29 = vmul.f32 0.0625, %v252_v27 }
 0x257   :  { %v256_v30 = vmax.f32 %v255_v28, %v253_v29 }
 0x259   :  { %v257_v31 = vsub.f32 %v191_v22, %v256_v30  ;;  %v260_v32 = vsub.f32 %v213_v23, %v256_v30  ;;  %v263_v33 = vsub.f32 %v233_v26, %v256_v30  ;;  %v266_v34 = vsub.f32 %v253_v29, %v256_v30 }
 0x25b   :  { %v258_v35 = vmul.f32 1.442695, %v257_v31  ;;  %v261_v36 = vmul.f32 1.442695, %v260_v32  ;;  %v264_v37 = vmul.f32 1.442695, %v263_v33 }
 0x25c   :  { %v267_v38 = vmul.f32 1.442695, %v266_v34 }
 0x25d   :  { %480 = vpow2.f32 %v258_v35 }
 0x25e   :  { %482 = vpow2.f32 %v261_v36 }
 0x25f   :  { %484 = vpow2.f32 %v264_v37 }
 0x260   :  { %486 = vpow2.f32 %v267_v38 }
 0x267   :  { %v481_v39 = vpop.eup %480 }
 0x268   :  { %v483_v40 = vpop.eup %482 }
 0x269   :  { %v269_v41 = vadd.f32 %v483_v40, %v481_v39  ;;  %v485_v42 = vpop.eup %484 }
 0x26a   :  { %v487_v44 = vpop.eup %486 }
 0x26b   :  { %v270_v43 = vadd.f32 %v485_v42, %v269_v41 }
 0x26d   :  { %v271_v45 = vadd.f32 %v487_v44, %v270_v43 }
 0x26f   :  { %488 = vrcp.f32 %v271_v45 }
 0x279   :  { %v489_v46 = vpop.eup %488 }
 0x27a   :  { %v279_v47 = vmul.f32 %v489_v46, %v483_v40  ;;  %v274_v48 = vmul.f32 %v489_v46, %v481_v39  ;;  %v309_v51 = vmul.f32 %v489_v46, %v487_v44  ;;  %v294_v52 = vmul.f32 %v489_v46, %v485_v42 }
 0x27c   :  { %v283_v49 = vmul.f32 %v279_v47, %v587_v1  ;;  %v282_v50 = vmul.f32 %v279_v47, %v582_v0  ;;  %276 = vst.msk [vmem:[#allocation6] sm:$0x1] %vm275_vm1, %v274_v48  ;;  %v312_v53 = vmul.f32 %v309_v51, %v582_v0  ;;  %v297_v54 = vmul.f32 %v294_v52, %v582_v0 }
 0x27d   :  { %281 = vst.msk [vmem:[#allocation6] sm:$0x1] %vm280_vm2, %v279_v47  ;;  %v298_v55 = vmul.f32 %v294_v52, %v587_v1 }
 0x27e   :  { %288 = vrot.lane.b32.xlu0 %v283_v49, %s540_s30  ;;  %286 = vrot.lane.b32.xlu1 %v282_v50, %s540_s30  ;;  %296 = vst.msk [vmem:[#allocation6] sm:$0x1] %vm295_vm3, %v294_v52 }
 0x27f   :  { %311 = vst.msk [vmem:[#allocation6] sm:$0x1] %vm310_vm4, %v309_v51 }
 0x282   :  { %316 = vrot.lane.b32.xlu0 %v312_v53, %s543_s10  ;;  %301 = vrot.lane.b32.xlu1 %v297_v54, %s544_s11 }
 0x283   :  { %501 = shalt.err (!%p498_p4)
}
 0x284   :  { %s502_s18 = scalar_lea.hbm %s694_s5, 16 }
 0x285   :  { %p503_p5 = scmp.ne.s32.totalorder %s694_s5, %s502_s18  ;;  %p506_p6 = scmp.lt.u32.totalorder %s502_s18, %s694_s5 }
 0x287   :  { %p508_p7 = pnand %p506_p6, %p503_p5 }
 0x289   :  { %511 = shalt.err (!%p508_p7)
}
 0x28a   :  { %348 = dma.vmem_to_hbm [thread:$0]  %s346_s13, 16, %s694_s5, [#allocation7]   ;;  %303 = vrot.lane.b32.xlu1 %v298_v55, %s544_s11  ;;  %v313_v56 = vmul.f32 %v309_v51, %v587_v1  ;;  %v277_v59 = vmul.f32 %v274_v48, %v582_v0  ;;  %vm324_vm5 = vcmask 261120   ;;  %v278_v2 = vmul.f32 %v274_v48, %v587_v1 }
 0x28b   :  { %s546_s5 = smov [#allocation4]  }
 0x28c   :  { %s332_s25 = sshll.u32 %s546_s5, 4  ;;  %s333_s25 = int_to_ptr.vmem [resolvable:$true] %s332_s25 }
 0x28d   :  { %s512_s26 = scalar_lea.vmem %s333_s25, 256  ;;  %p517_p9 = scmp.lt.s32.totalorder %s333_s25, %s333_s25 }
 0x28e   :  { %318 = vrot.lane.b32.xlu1 %v313_v56, %s543_s10  ;;  %p513_p8 = scmp.ne.s32.totalorder %s333_s25, %s512_s26  ;;  %p518_p10 = scmp.lt.s32.totalorder %s512_s26, %s512_s26 }
 0x290   :  { %p519_p11 = por %p518_p10, %p517_p9 }
 0x292   :  { %p520_p12 = pnand %p519_p11, %p513_p8 }
 0x2f0   :  { %v289_v57 = vpop.permute.xlu0 %288  ;;  %v287_v58 = vpop.permute.xlu1 %286 }
 0x2f1   :  { %v292_v60 = vadd.f32 %v287_v58, %v277_v59  ;;  %v293_v5 = vadd.f32 %v289_v57, %v278_v2 }
 0x2f4   :  { %v302_v61 = vpop.permute.xlu1 %301  ;;  %v317_v63 = vpop.permute.xlu0 %316 }
 0x2f5   :  { %v307_v62 = vadd.f32 %v302_v61, %v292_v60 }
 0x2f7   :  { %v322_v3 = vadd.f32 %v317_v63, %v307_v62 }
 0x2f9   :  { %325 = vst.msk [vmem:[#allocation4] sm:$0xff] %vm324_vm5, %v322_v3 }
 0x2fc   :  { %v304_v4 = vpop.permute.xlu1 %303 }
 0x2fd   :  { %v308_v6 = vadd.f32 %v304_v4, %v293_v5 }
 0x300   :  { %v319_v7 = vpop.permute.xlu1 %318 }
 0x301   :  { %v323_v8 = vadd.f32 %v319_v7, %v308_v6 }
 0x303   :  { %326 = vst.msk [vmem:[#allocation4 + $0x8] sm:$0xff] %vm324_vm5, %v323_v8 }
 0x304   :  { %523 = shalt.err (!%p520_p12)
}
 0x305   :  { %s524_s28 = scalar_lea.hbm %s693_s4, 256 }
 0x306   :  { %p525_p13 = scmp.ne.s32.totalorder %s693_s4, %s524_s28  ;;  %p528_p0 = scmp.lt.u32.totalorder %s524_s28, %s693_s4 }
 0x308   :  { %p530_p1 = pnand %p528_p0, %p525_p13 }
 0x30a   :  { %533 = shalt.err (!%p530_p1)
}
 0x30b   :  { %s547_s2 = smov 128   ;;  %s548_s3 = smov 8  }
 0x30c   :  { %338 = dma.vmem_to_hbm [thread:$0]  %s333_s25, 256, %s693_s4, [#allocation5], %s547_s2, %s547_s2, %s548_s3  }
 0x30d   :  { %536 = dma.done.wait [#allocation5], 256  }
 0x30e   :  { %537 = vsyncadd [#allocation5], 4294967040 }
 0x30f   :  { %538 = dma.done.wait [#allocation7], 16  }
 0x310   :  { %539 = vsyncadd [#allocation7], 4294967280 }
 0x311   :  { %355 = vsyncpa [#allocation5], 1 }
 0x312   :  { %356 = vsyncpa [#allocation7], 1 }
 0x313   :  { %357 = vsyncmov [#allocation3] }
 0x316   :  { %s358_s9 = vpop.sfrf %357 }
 0x317   :  { %p373_p2 = scmp.ne.s32.totalorder %s358_s9, 0 }
 0x319   :  { %362 = shalt.err (%p373_p2)  }

</bundles_post_ra>
